<compile_context>
chip_gen: v7x
topology: tpu7x:2x2x1
jax: 0.10.0
libtpu: 0.0.40
codegen_flags: <defaults>
</compile_context>

<pallas_src>
import functools

import jax
import jax.numpy as jnp
from jax import lax
from jax.experimental import pallas as pl
from jax.experimental.pallas import tpu as pltpu

LOSS_WEIGHTS = (0.7, 0.3)  # [w_mse, w_l1] — deterministic "parameters"
LANE = 128
SUB = 8  # f32 sublanes per vreg


def _round_up(a, b):
    return ((a + b - 1) // b) * b


def _losses_list_kernel(x_ref, y_ref, sq_ref, abs_ref, *,
                        blocks_per_core, tile_rows, chunk, rows, nblocks,
                        need_edge, unroll):
    c = pl.program_id(0)   # core-split axis ("parallel")
    i = pl.program_id(1)   # streaming/reduction axis ("arbitrary")

    @pl.when(i == 0)
    def _():
        sq_ref[...] = jnp.zeros_like(sq_ref)
        abs_ref[...] = jnp.zeros_like(abs_ref)

    blk = c * blocks_per_core + i          # global, UNclamped block id
    row0 = blk * tile_rows                 # first global row of this block
    n_chunks = tile_rows // chunk
    n_sub = chunk // SUB

    def make_body(masked):
        def body(j, carry):
            acc_sq, acc_abs = carry
            r = pl.multiple_of(j * chunk, chunk)
            xv = x_ref[pl.ds(r, chunk), :].astype(jnp.float32)
            yv = y_ref[pl.ds(r, chunk), :].astype(jnp.float32)
            d = xv - yv
            if masked:
                # Row-validity only (lanes are always full after the wrapper
                # pushes the ragged tail out of the kernel).  Keep select
                # semantics (NOT a multiply) so garbage/NaN padding of the
                # partial last block can never leak into the sums.
                ridx = (row0 + r
                        + lax.broadcasted_iota(jnp.int32, (chunk, LANE), 0))
                d = jnp.where(ridx < rows, d, 0.0)
            # Reduce the (chunk, 128) slice to one (8, 128) vreg per loss with
            # pure VPU adds; everything stays register-resident per chunk.
            acc_sq = acc_sq + (d * d).reshape(n_sub, SUB, LANE).sum(axis=0)
            acc_abs = acc_abs + jnp.abs(d).reshape(n_sub, SUB, LANE).sum(axis=0)
            return acc_sq, acc_abs
        return body

    def run(masked):
        z = jnp.zeros((SUB, LANE), jnp.float32)
        acc_sq, acc_abs = lax.fori_loop(0, n_chunks, make_body(masked),
                                        (z, z), unroll=unroll)
        sq_ref[...] += acc_sq
        abs_ref[...] += acc_abs

    if need_edge:
        # Only the last real block (possibly partial) and the (at most one)
        # clamped overflow slot pay for the iota/compare/select mask; every
        # interior block runs the unmasked fast path.
        @pl.when(blk < nblocks - 1)
        def _():
            run(masked=False)

        @pl.when(blk >= nblocks - 1)
        def _():
            run(masked=True)
    else:
        run(masked=False)


def losses_list_forward(x, y, weights=LOSS_WEIGHTS):
    """Weighted sum of [MSE, L1] losses, computed in a single Pallas kernel."""
    assert x.shape == y.shape
    n_elems = x.size
    w_mse, w_l1 = float(weights[0]), float(weights[1])

    xf = jnp.ravel(x)
    yf = jnp.ravel(y)
    full_rows, rem = divmod(n_elems, LANE)

    tail_sq = 0.0
    tail_abs = 0.0
    if rem:
        # Ragged (<128 elem) tail: a couple of jnp ops on the last `rem`
        # elements instead of zero-padding (and copying) the whole array.
        xt = lax.slice(xf, (full_rows * LANE,), (n_elems,)).astype(jnp.float32)
        yt = lax.slice(yf, (full_rows * LANE,), (n_elems,)).astype(jnp.float32)
        dt = xt - yt
        tail_sq = jnp.sum(dt * dt)
        tail_abs = jnp.sum(jnp.abs(dt))

    if full_rows == 0:
        inv_n = 1.0 / float(n_elems)
        return w_mse * (tail_sq * inv_n) + w_l1 * (tail_abs * inv_n)

    if rem:
        # Aligned prefix for the kernel (tail already accounted for above).
        xf = lax.slice(xf, (0,), (full_rows * LANE,))
        yf = lax.slice(yf, (0,), (full_rows * LANE,))

    rows = full_rows
    x2 = xf.reshape(rows, LANE)
    y2 = yf.reshape(rows, LANE)

    # ~2 MiB per input per block (4096 f32 rows / 8192 bf16 rows):
    # 2 inputs x 2 pipeline buffers x 2 MiB = 8 MiB VMEM — fits every
    # generation (incl. v7x 64 MiB physical) while amortizing the
    # ~0.35us/step fixed grid overhead so the stream runs near HBM roofline.
    target_rows = 4096 if jnp.dtype(x.dtype).itemsize >= 4 else 8192
    tile_rows = min(target_rows, _round_up(rows, SUB))
    chunk = min(64, tile_rows)            # 64 rows = 8 f32 vregs per operand
    tile_rows = _round_up(tile_rows, chunk)
    nblocks = pl.cdiv(rows, tile_rows)

    # Split the row stream across (up to) two TensorCores (helps v7x; a no-op
    # on single-core v5e/v6e). Each core owns its own partial-sum output.
    ncores = min(2, nblocks)
    blocks_per_core = pl.cdiv(nblocks, ncores)

    # Edge handling needed iff the last block is partial or the core split
    # leaves one clamped overflow slot (its re-read data is masked to zero).
    need_edge = (rows % tile_rows != 0) or (nblocks % ncores != 0)

    n_chunks = tile_rows // chunk
    unroll = 4 if n_chunks >= 8 else True

    def in_index_map(c, i):
        # Clamp so the (at most one) out-of-range trailing slot just re-reads
        # the last valid block; its contribution is masked to zero.
        return (jnp.minimum(c * blocks_per_core + i, nblocks - 1), 0)

    kernel = functools.partial(
        _losses_list_kernel,
        blocks_per_core=blocks_per_core,
        tile_rows=tile_rows,
        chunk=chunk,
        rows=rows,
        nblocks=nblocks,
        need_edge=need_edge,
        unroll=unroll,
    )

    sq_part, abs_part = pl.pallas_call(
        kernel,
        out_shape=(
            jax.ShapeDtypeStruct((ncores, SUB, LANE), jnp.float32),
            jax.ShapeDtypeStruct((ncores, SUB, LANE), jnp.float32),
        ),
        grid_spec=pltpu.PrefetchScalarGridSpec(
            num_scalar_prefetch=0,
            grid=(ncores, blocks_per_core),
            in_specs=[
                pl.BlockSpec((tile_rows, LANE), in_index_map),
                pl.BlockSpec((tile_rows, LANE), in_index_map),
            ],
            out_specs=(
                pl.BlockSpec((None, SUB, LANE), lambda c, i: (c, 0, 0)),
                pl.BlockSpec((None, SUB, LANE), lambda c, i: (c, 0, 0)),
            ),
        ),
        compiler_params=pltpu.CompilerParams(
            dimension_semantics=("parallel", "arbitrary"),
            vmem_limit_bytes=32 * 1024 * 1024,
        ),
    )(x2, y2)

    # Tiny final reduction + weighted combine (at most 2 * 2 * 1024 floats).
    # f32 accumulation over >=1e9 elements may drift slightly vs a mean-based
    # reference; per-lane/per-core partials mitigate this.
    inv_n = 1.0 / float(n_elems)
    mse = (jnp.sum(sq_part) + tail_sq) * inv_n
    l1 = (jnp.sum(abs_part) + tail_abs) * inv_n
    return w_mse * mse + w_l1 * l1


def losses_list_ref(x, y, weights=LOSS_WEIGHTS):
    d = x.astype(jnp.float32) - y.astype(jnp.float32)
    mse = jnp.mean(d * d)
    l1 = jnp.mean(jnp.abs(d))
    return weights[0] * mse + weights[1] * l1


if __name__ == "__main__":
    key = jax.random.PRNGKey(0)
    kx, ky = jax.random.split(key)
    B, C, H, W = 2, 4, 16, 16
    x = jax.random.normal(kx, (B, C, H, W), dtype=jnp.float32)
    y = jax.random.normal(ky, (B, C, H, W), dtype=jnp.float32)

    out = losses_list_forward(x, y)
    out = jax.block_until_ready(out)

    ref = losses_list_ref(x, y)
    assert jnp.allclose(out, ref, rtol=1e-5, atol=1e-5), (out, ref)
    print("KERNEL_OK")
</pallas_src>

<mosaic_0001>
module attributes {stable_mosaic.version = 11 : i64} {
  func.func @_losses_list_kernel(%arg0: i32, %arg1: i32, %arg2: memref<16x128xf32, #tpu.memory_space<vmem>>, %arg3: memref<16x128xf32, #tpu.memory_space<vmem>>, %arg4: memref<1x8x128xf32, #tpu.memory_space<vmem>>, %arg5: memref<1x8x128xf32, #tpu.memory_space<vmem>>) attributes {dimension_semantics = [#tpu.dimension_semantics<parallel>, #tpu.dimension_semantics<arbitrary>], iteration_bounds = array<i64: 1, 1>, scalar_prefetch = 0 : i64, scratch_operands = 0 : i64, tpu.core_type = #tpu.core_type<tc>, window_params = [{transform_indices = @transform_0, window_bounds = array<i64: 16, 128>}, {transform_indices = @transform_1, window_bounds = array<i64: 16, 128>}, {transform_indices = @transform_2, window_bounds = array<i64: 1, 8, 128>}, {transform_indices = @transform_3, window_bounds = array<i64: 1, 8, 128>}]} {
    %c0_i32 = arith.constant 0 : i32
    %0 = arith.cmpi eq, %arg1, %c0_i32 : i32
    %1 = arith.extui %0 : i1 to i32
    %c0_i32_0 = arith.constant 0 : i32
    %2 = arith.cmpi ne, %1, %c0_i32_0 : i32
    scf.if %2 {
      %cst_17 = arith.constant 0.000000e+00 : f32
      %31 = vector.broadcast %cst_17 : f32 to vector<8x128xf32>
      %c0_18 = arith.constant 0 : index
      %c0_19 = arith.constant 0 : index
      %c0_20 = arith.constant 0 : index
      %32 = vector.load %arg4[%c0_18, %c0_19, %c0_20] : memref<1x8x128xf32, #tpu.memory_space<vmem>>, vector<1x8x128xf32>
      %33 = vector.shape_cast %32 : vector<1x8x128xf32> to vector<8x128xf32>
      %34 = vector.shape_cast %31 : vector<8x128xf32> to vector<1x8x128xf32>
      tpu.vector_store %arg4[%c0_18, %c0_19, %c0_20], %34 {strides = array<i32>} : memref<1x8x128xf32, #tpu.memory_space<vmem>>, vector<1x8x128xf32>,
      %cst_21 = arith.constant 0.000000e+00 : f32
      %35 = vector.broadcast %cst_21 : f32 to vector<8x128xf32>
      %c0_22 = arith.constant 0 : index
      %c0_23 = arith.constant 0 : index
      %c0_24 = arith.constant 0 : index
      %36 = vector.load %arg5[%c0_22, %c0_23, %c0_24] : memref<1x8x128xf32, #tpu.memory_space<vmem>>, vector<1x8x128xf32>
      %37 = vector.shape_cast %36 : vector<1x8x128xf32> to vector<8x128xf32>
      %38 = vector.shape_cast %35 : vector<8x128xf32> to vector<1x8x128xf32>
      tpu.vector_store %arg5[%c0_22, %c0_23, %c0_24], %38 {strides = array<i32>} : memref<1x8x128xf32, #tpu.memory_space<vmem>>, vector<1x8x128xf32>,
    } else {
    }
    %cst = arith.constant 0.000000e+00 : f32
    %3 = vector.broadcast %cst : f32 to vector<8x128xf32>
    %c0_i32_1 = arith.constant 0 : i32
    %c16_i32 = arith.constant 16 : i32
    %4 = arith.muli %c0_i32_1, %c16_i32 : i32
    %5 = tpu.assume_multiple %4, 16 : i32
    %6 = arith.index_cast %5 : i32 to index
    %c0 = arith.constant 0 : index
    %7 = vector.load %arg2[%6, %c0] : memref<16x128xf32, #tpu.memory_space<vmem>>, vector<16x128xf32>
    %8 = arith.index_cast %5 : i32 to index
    %c0_2 = arith.constant 0 : index
    %9 = vector.load %arg3[%8, %c0_2] : memref<16x128xf32, #tpu.memory_space<vmem>>, vector<16x128xf32>
    %10 = arith.subf %7, %9 : vector<16x128xf32>
    %11 = arith.mulf %10, %10 : vector<16x128xf32>
    %12 = vector.shape_cast %11 : vector<16x128xf32> to vector<2x8x128xf32>
    %cst_3 = arith.constant dense<0.000000e+00> : vector<8x128xf32>
    %13 = vector.multi_reduction <add>, %12, %cst_3 [0] : vector<2x8x128xf32> to vector<8x128xf32>
    %14 = arith.addf %3, %13 : vector<8x128xf32>
    %15 = math.absf %10 : vector<16x128xf32>
    %16 = vector.shape_cast %15 : vector<16x128xf32> to vector<2x8x128xf32>
    %cst_4 = arith.constant dense<0.000000e+00> : vector<8x128xf32>
    %17 = vector.multi_reduction <add>, %16, %cst_4 [0] : vector<2x8x128xf32> to vector<8x128xf32>
    %18 = arith.addf %3, %17 : vector<8x128xf32>
    %c1_i32 = arith.constant 1 : i32
    %c0_5 = arith.constant 0 : index
    %c0_6 = arith.constant 0 : index
    %c0_7 = arith.constant 0 : index
    %19 = vector.load %arg4[%c0_5, %c0_6, %c0_7] : memref<1x8x128xf32, #tpu.memory_space<vmem>>, vector<1x8x128xf32>
    %20 = vector.shape_cast %19 : vector<1x8x128xf32> to vector<8x128xf32>
    %21 = arith.addf %20, %14 : vector<8x128xf32>
    %c0_8 = arith.constant 0 : index
    %c0_9 = arith.constant 0 : index
    %c0_10 = arith.constant 0 : index
    %22 = vector.load %arg4[%c0_8, %c0_9, %c0_10] : memref<1x8x128xf32, #tpu.memory_space<vmem>>, vector<1x8x128xf32>
    %23 = vector.shape_cast %22 : vector<1x8x128xf32> to vector<8x128xf32>
    %24 = vector.shape_cast %21 : vector<8x128xf32> to vector<1x8x128xf32>
    tpu.vector_store %arg4[%c0_8, %c0_9, %c0_10], %24 {strides = array<i32>} : memref<1x8x128xf32, #tpu.memory_space<vmem>>, vector<1x8x128xf32>,
    %c0_11 = arith.constant 0 : index
    %c0_12 = arith.constant 0 : index
    %c0_13 = arith.constant 0 : index
    %25 = vector.load %arg5[%c0_11, %c0_12, %c0_13] : memref<1x8x128xf32, #tpu.memory_space<vmem>>, vector<1x8x128xf32>
    %26 = vector.shape_cast %25 : vector<1x8x128xf32> to vector<8x128xf32>
    %27 = arith.addf %26, %18 : vector<8x128xf32>
    %c0_14 = arith.constant 0 : index
    %c0_15 = arith.constant 0 : index
    %c0_16 = arith.constant 0 : index
    %28 = vector.load %arg5[%c0_14, %c0_15, %c0_16] : memref<1x8x128xf32, #tpu.memory_space<vmem>>, vector<1x8x128xf32>
    %29 = vector.shape_cast %28 : vector<1x8x128xf32> to vector<8x128xf32>
    %30 = vector.shape_cast %27 : vector<8x128xf32> to vector<1x8x128xf32>
    tpu.vector_store %arg5[%c0_14, %c0_15, %c0_16], %30 {strides = array<i32>} : memref<1x8x128xf32, #tpu.memory_space<vmem>>, vector<1x8x128xf32>,
    return
  }
  func.func @transform_0(%arg0: i32, %arg1: i32) -> (i32, i32) {
    %c1_i32 = arith.constant 1 : i32
    %0 = arith.muli %arg0, %c1_i32 : i32
    %1 = arith.addi %0, %arg1 : i32
    %c0_i32 = arith.constant 0 : i32
    %2 = arith.minsi %1, %c0_i32 : i32
    %c0_i32_0 = arith.constant 0 : i32
    %c0_i32_1 = arith.constant 0 : i32
    return %2, %c0_i32_0 : i32, i32
  }
  func.func @transform_1(%arg0: i32, %arg1: i32) -> (i32, i32) {
    %c1_i32 = arith.constant 1 : i32
    %0 = arith.muli %arg0, %c1_i32 : i32
    %1 = arith.addi %0, %arg1 : i32
    %c0_i32 = arith.constant 0 : i32
    %2 = arith.minsi %1, %c0_i32 : i32
    %c0_i32_0 = arith.constant 0 : i32
    %c0_i32_1 = arith.constant 0 : i32
    return %2, %c0_i32_0 : i32, i32
  }
  func.func @transform_2(%arg0: i32, %arg1: i32) -> (i32, i32, i32) {
    %c0_i32 = arith.constant 0 : i32
    %c0_i32_0 = arith.constant 0 : i32
    %c0_i32_1 = arith.constant 0 : i32
    return %arg0, %c0_i32, %c0_i32_0 : i32, i32, i32
  }
  func.func @transform_3(%arg0: i32, %arg1: i32) -> (i32, i32, i32) {
    %c0_i32 = arith.constant 0 : i32
    %c0_i32_0 = arith.constant 0 : i32
    %c0_i32_1 = arith.constant 0 : i32
    return %arg0, %c0_i32, %c0_i32_0 : i32, i32, i32
  }
}

</mosaic_0001>

<bundles_post_ra>
// kernel: tpu_custom_call.1
= control target key start
LH: loop header
LB: loop body
LE: loop exit
PB: predicated region body
PF: predicated region fallthrough
CT: control target
= control target key end

     0   :  { %9 = vsyncpa [#allocation3], 0  ;;  %s300_s0 = inlined_call_operand.hbm [shape: f32[16,128], index: 0, kind: input, shape index: {}]   ;;  %s301_s1 = inlined_call_operand.hbm [shape: f32[16,128], index: 1, kind: input, shape index: {}]   ;;  %s302_s2 = inlined_call_operand.hbm [shape: f32[1,8,128], index: 2, kind: output, shape index: {0}]   ;;  %s303_s3 = inlined_call_operand.hbm [shape: f32[1,8,128], index: 3, kind: output, shape index: {1}]  }
   0x1   :  { %10 = vsyncpa [#allocation6], 0 }
   0x2   :  { %11 = vsyncpa [#allocation4], 0 }
   0x3   :  { %12 = vsyncpa [#allocation9], 0  ;;  %s226_s12 = smov [#allocation2]   ;;  %s130_s16 = scalar_lea.hbm %s300_s0, 256 }
   0x4   :  { %s24_s13 = sshll.u32 %s226_s12, 4  ;;  %p131_p0 = scmp.ne.s32.totalorder %s300_s0, %s130_s16  ;;  %s25_s13 = int_to_ptr.vmem [resolvable:$true] %s24_s13 }
   0x5   :  { %p134_p1 = scmp.lt.u32.totalorder %s130_s16, %s300_s0 }
   0x7   :  { %p136_p2 = pnand %p134_p1, %p131_p0 }
   0x9   :  { %139 = shalt.err (!%p136_p2)
}
   0xa   :  { %s140_s21 = scalar_lea.vmem %s25_s13, 256  ;;  %p145_p4 = scmp.lt.s32.totalorder %s25_s13, %s25_s13 }
   0xb   :  { %p141_p3 = scmp.ne.s32.totalorder %s25_s13, %s140_s21  ;;  %p146_p5 = scmp.lt.s32.totalorder %s140_s21, %s140_s21 }
   0xd   :  { %p147_p6 = por %p146_p5, %p145_p4 }
   0xf   :  { %p148_p7 = pnand %p147_p6, %p141_p3 }
  0x11   :  { %151 = shalt.err (!%p148_p7)
}
  0x12   :  { %s227_s22 = smov 128   ;;  %s228_s23 = smov 8  }
  0x13   :  { %30 = dma.hbm_to_vmem [thread:$0]  %s300_s0, 256, %s25_s13, [#allocation3], %s227_s22, %s227_s22, %s228_s23  }
  0x14   :  { %s229_s26 = smov [#allocation5]   ;;  %s152_s30 = scalar_lea.hbm %s301_s1, 256 }
  0x15   :  { %s42_s27 = sshll.u32 %s229_s26, 4  ;;  %p153_p8 = scmp.ne.s32.totalorder %s301_s1, %s152_s30  ;;  %s43_s27 = int_to_ptr.vmem [resolvable:$true] %s42_s27 }
  0x16   :  { %p156_p9 = scmp.lt.u32.totalorder %s152_s30, %s301_s1 }
  0x18   :  { %p158_p10 = pnand %p156_p9, %p153_p8 }
  0x1a   :  { %161 = shalt.err (!%p158_p10)
}
  0x1b   :  { %s162_s8 = scalar_lea.vmem %s43_s27, 256  ;;  %p167_p12 = scmp.lt.s32.totalorder %s43_s27, %s43_s27 }
  0x1c   :  { %p163_p11 = scmp.ne.s32.totalorder %s43_s27, %s162_s8  ;;  %p168_p13 = scmp.lt.s32.totalorder %s162_s8, %s162_s8 }
  0x1e   :  { %p169_p0 = por %p168_p13, %p167_p12 }
  0x20   :  { %p170_p1 = pnand %p169_p0, %p163_p11 }
  0x22   :  { %173 = shalt.err (!%p170_p1)
}
  0x23   :  { %48 = dma.hbm_to_vmem [thread:$0]  %s301_s1, 256, %s43_s27, [#allocation6], %s227_s22, %s227_s22, %s228_s23  }
  0x24   :  { %218 = dma.done.wait [#allocation3], 256  }
  0x25   :  { %219 = vsyncadd [#allocation3], 4294967040 }
  0x26   :  { %220 = dma.done.wait [#allocation6], 256  }
  0x27   :  { %221 = vsyncadd [#allocation6], 4294967040  ;;  %v69_v0 = vld [vmem:[#allocation2] sm:$0xff]  ;;  %v70_v1 = vld [vmem:[#allocation2 + $0x8] sm:$0xff]  ;;  %s230_s10 = smov [#allocation7]   ;;  %s231_s12 = smov [#allocation8]  }
  0x28   :  { %v71_v2 = vld [vmem:[#allocation5] sm:$0xff]  ;;  %v72_v3 = vld [vmem:[#allocation5 + $0x8] sm:$0xff]  ;;  %s95_s11 = sshll.u32 %s230_s10, 4  ;;  %s105_s1 = sshll.u32 %s231_s12, 4  ;;  %s96_s11 = int_to_ptr.vmem [resolvable:$true] %s95_s11  ;;  %s106_s1 = int_to_ptr.vmem [resolvable:$true] %s105_s1 }
  0x29   :  { %v73_v4 = vsub.f32 %v69_v0, %v71_v2  ;;  %v74_v5 = vsub.f32 %v70_v1, %v72_v3  ;;  %s174_s13 = scalar_lea.vmem %s96_s11, 128  ;;  %p179_p3 = scmp.lt.s32.totalorder %s96_s11, %s96_s11 }
  0x2a   :  { %p175_p2 = scmp.ne.s32.totalorder %s96_s11, %s174_s13  ;;  %p180_p4 = scmp.lt.s32.totalorder %s174_s13, %s174_s13 }
  0x2b   :  { %v75_v6 = vmul.f32 %v73_v4, %v73_v4  ;;  %v79_v7 = vand.u32 2147483647, %v73_v4  ;;  %v76_v8 = vmul.f32 %v74_v5, %v74_v5  ;;  %v80_v9 = vand.u32 2147483647, %v74_v5 }
  0x2c   :  { %p181_p5 = por %p180_p4, %p179_p3 }
  0x2d   :  { %v77_v10 = vadd.f32 %v76_v8, %v75_v6  ;;  %v81_v11 = vadd.f32 %v80_v9, %v79_v7 }
  0x2e   :  { %p182_p6 = pnand %p181_p5, %p175_p2 }
  0x2f   :  { %85 = vst [vmem:[#allocation7] sm:$0xff] %v77_v10  ;;  %88 = vst [vmem:[#allocation8] sm:$0xff] %v81_v11 }
  0x30   :  { %185 = shalt.err (!%p182_p6)
}
  0x31   :  { %s186_s16 = scalar_lea.hbm %s302_s2, 128 }
  0x32   :  { %p187_p7 = scmp.ne.s32.totalorder %s302_s2, %s186_s16  ;;  %p190_p8 = scmp.lt.u32.totalorder %s186_s16, %s302_s2 }
  0x34   :  { %p192_p9 = pnand %p190_p8, %p187_p7 }
  0x36   :  { %195 = shalt.err (!%p192_p9)
}
  0x37   :  { %98 = dma.vmem_to_hbm [thread:$0]  %s96_s11, 128, %s302_s2, [#allocation4]  }
  0x38   :  { %s196_s23 = scalar_lea.vmem %s106_s1, 128  ;;  %p201_p11 = scmp.lt.s32.totalorder %s106_s1, %s106_s1 }
  0x39   :  { %p197_p10 = scmp.ne.s32.totalorder %s106_s1, %s196_s23  ;;  %p202_p12 = scmp.lt.s32.totalorder %s196_s23, %s196_s23 }
  0x3b   :  { %p203_p13 = por %p202_p12, %p201_p11 }
  0x3d   :  { %p204_p0 = pnand %p203_p13, %p197_p10 }
  0x3f   :  { %207 = shalt.err (!%p204_p0)
}
  0x40   :  { %s208_s26 = scalar_lea.hbm %s303_s3, 128 }
  0x41   :  { %p209_p1 = scmp.ne.s32.totalorder %s303_s3, %s208_s26  ;;  %p212_p2 = scmp.lt.u32.totalorder %s208_s26, %s303_s3 }
  0x43   :  { %p214_p3 = pnand %p212_p2, %p209_p1 }
  0x45   :  { %217 = shalt.err (!%p214_p3)
}
  0x46   :  { %108 = dma.vmem_to_hbm [thread:$0]  %s106_s1, 128, %s303_s3, [#allocation9]  }
  0x47   :  { %222 = dma.done.wait [#allocation4], 128  }
  0x48   :  { %223 = vsyncadd [#allocation4], 4294967168 }
  0x49   :  { %224 = dma.done.wait [#allocation9], 128  }
  0x4a   :  { %225 = vsyncadd [#allocation9], 4294967168 }
  0x4b   :  { %115 = vsyncpa [#allocation3], 1 }
  0x4c   :  { %116 = vsyncpa [#allocation6], 1 }
  0x4d   :  { %117 = vsyncpa [#allocation4], 1 }
  0x4e   :  { %118 = vsyncpa [#allocation9], 1 }

</bundles_post_ra>
